<compile_context>
chip_gen: v5e
topology: v5e:2x2
jax: 0.10.0
libtpu: 0.0.40
codegen_flags: <defaults>
</compile_context>

<pallas_src>
import jax
import jax.numpy as jnp
from jax.experimental import pallas as pl
from jax.experimental.pallas import tpu as pltpu

_NEG_BIG = -1e30  # "masked" logit; exp(_NEG_BIG - finite_max) == 0 in f32


def _cdiv(a: int, b: int) -> int:
    return -(-a // b)


def _layout(x: jax.Array, block_rows: int, max_block_lanes: int):
    """Pad a 1-D score vector to a lane/sublane-dense (chunks*rows, lanes) slab."""
    x = x.reshape(-1)
    n = x.shape[0]
    # Smallest lane count (multiple of 128) that covers the data in one chunk,
    # capped at max_block_lanes.
    lanes = min(max_block_lanes, 128 * max(1, _cdiv(_cdiv(n, block_rows), 128)))
    block_elems = block_rows * lanes
    chunks = _cdiv(n, block_elems)
    total = chunks * block_elems
    x = jnp.pad(x, (0, total - n))
    return x.reshape(chunks * block_rows, lanes), n, lanes, chunks


def make_circle_loss(m: float, gamma: float, *, block_rows: int = 8,
                     max_block_lanes: int = 2048):
    """Returns circle_loss(sp, sn) -> scalar f32 loss (forward pass of CircleLoss)."""

    m = float(m)
    gamma = float(gamma)

    def circle_loss(sp: jax.Array, sn: jax.Array) -> jax.Array:
        sp2, n_p, bl_p, chunks_p = _layout(sp, block_rows, max_block_lanes)
        sn2, n_n, bl_n, chunks_n = _layout(sn, block_rows, max_block_lanes)
        grid_len = max(chunks_p, chunks_n)

        def kernel(sp_ref, sn_ref, out_ref, mp_ref, sp_s_ref, mn_ref, sn_s_ref):
            pid = pl.program_id(0)

            @pl.when(pid == 0)
            def _init():
                mp_ref[...] = jnp.full((1, 1), _NEG_BIG, jnp.float32)
                sp_s_ref[...] = jnp.zeros((1, 1), jnp.float32)
                mn_ref[...] = jnp.full((1, 1), _NEG_BIG, jnp.float32)
                sn_s_ref[...] = jnp.zeros((1, 1), jnp.float32)

            def _full_max(v):
                return jnp.max(jnp.max(v, axis=1, keepdims=True), axis=0,
                               keepdims=True)

            def _full_sum(v):
                return jnp.sum(jnp.sum(v, axis=1, keepdims=True), axis=0,
                               keepdims=True)

            def accumulate(x_ref, n_valid, lanes, m_ref, s_ref, positive):
                x = x_ref[...].astype(jnp.float32)          # (block_rows, lanes)
                rows = jax.lax.broadcasted_iota(jnp.int32, x.shape, 0)
                cols = jax.lax.broadcasted_iota(jnp.int32, x.shape, 1)
                flat = (pid * block_rows + rows) * lanes + cols
                valid = flat < n_valid
                if positive:
                    # ap = clamp_min(1 + m - sp, 0); logit_p = -ap*(sp-(1-m))*gamma
                    a = jnp.maximum((1.0 + m) - x, 0.0)
                    logit = (a * gamma) * ((1.0 - m) - x)
                else:
                    # an = clamp_min(sn + m, 0);     logit_n =  an*(sn-m)*gamma
                    a = jnp.maximum(x + m, 0.0)
                    logit = (a * gamma) * (x - m)
                logit = jnp.where(valid, logit, _NEG_BIG)

                m_old = m_ref[...]                           # (1, 1)
                m_new = jnp.maximum(m_old, _full_max(logit))
                s_new = s_ref[...] * jnp.exp(m_old - m_new) + _full_sum(
                    jnp.exp(logit - m_new))
                m_ref[...] = m_new
                s_ref[...] = s_new

            # Positive-pair stream (skip fully-padded trailing grid steps).
            if chunks_p == grid_len:
                accumulate(sp_ref, n_p, bl_p, mp_ref, sp_s_ref, True)
            else:
                pl.when(pid < chunks_p)(
                    lambda: accumulate(sp_ref, n_p, bl_p, mp_ref, sp_s_ref, True))

            # Negative-pair stream.
            if chunks_n == grid_len:
                accumulate(sn_ref, n_n, bl_n, mn_ref, sn_s_ref, False)
            else:
                pl.when(pid < chunks_n)(
                    lambda: accumulate(sn_ref, n_n, bl_n, mn_ref, sn_s_ref, False))

            @pl.when(pid == grid_len - 1)
            def _finalize():
                lse_p = mp_ref[...] + jnp.log(sp_s_ref[...])
                lse_n = mn_ref[...] + jnp.log(sn_s_ref[...])
                z = lse_p + lse_n
                # stable softplus: max(z, 0) + log1p(exp(-|z|))
                out_ref[...] = jnp.maximum(z, 0.0) + jnp.log1p(jnp.exp(-jnp.abs(z)))

            # Clamped index maps: once a stream runs out of real chunks we keep
            # re-presenting its last block (Pallas skips the redundant DMA when
            # the block index is unchanged); masking keeps it numerically inert.

        out = pl.pallas_call(
            kernel,
            out_shape=jax.ShapeDtypeStruct((1, 1), jnp.float32),
            grid_spec=pltpu.PrefetchScalarGridSpec(
                num_scalar_prefetch=0,
                grid=(grid_len,),
                in_specs=[
                    pl.BlockSpec((block_rows, bl_p),
                                 lambda i: (jnp.minimum(i, chunks_p - 1), 0)),
                    pl.BlockSpec((block_rows, bl_n),
                                 lambda i: (jnp.minimum(i, chunks_n - 1), 0)),
                ],
                out_specs=pl.BlockSpec((1, 1), lambda i: (0, 0)),
                scratch_shapes=[
                    pltpu.VMEM((1, 1), jnp.float32),   # running max, positives
                    pltpu.VMEM((1, 1), jnp.float32),   # running sum, positives
                    pltpu.VMEM((1, 1), jnp.float32),   # running max, negatives
                    pltpu.VMEM((1, 1), jnp.float32),   # running sum, negatives
                ],
            ),
            compiler_params=pltpu.CompilerParams(
                dimension_semantics=("arbitrary",),   # carried reduction axis
                vmem_limit_bytes=32 * 1024 * 1024,    # portable across v5e/v6e/v7x
            ),
        )(sp2, sn2)
        return out[0, 0]

    return circle_loss


def circle_loss_ref(sp, sn, m, gamma):
    """Pure-JAX reference mirroring the PyTorch forward exactly."""
    ap = jnp.maximum(-sp + 1.0 + m, 0.0)
    an = jnp.maximum(sn + m, 0.0)
    logit_p = -ap * (sp - (1.0 - m)) * gamma
    logit_n = an * (sn - m) * gamma
    z = jax.scipy.special.logsumexp(logit_n, axis=0) + jax.scipy.special.logsumexp(
        logit_p, axis=0
    )
    return jax.nn.softplus(z)


if __name__ == "__main__":
    # CircleLoss hyperparameters (nn.Module __init__ args) — deterministic, in-script.
    M = 0.25
    GAMMA = 64.0

    key = jax.random.PRNGKey(0)
    kp, kn, kp2, kn2 = jax.random.split(key, 4)

    loss_fn = make_circle_loss(M, GAMMA)

    # Small case (matches the typical per-anchor usage: few positives / negatives).
    sp = jax.random.uniform(kp, (8,), dtype=jnp.float32, minval=-1.0, maxval=1.0)
    sn = jax.random.uniform(kn, (24,), dtype=jnp.float32, minval=-1.0, maxval=1.0)
    loss = jax.block_until_ready(loss_fn(sp, sn))
    ref = circle_loss_ref(sp, sn, M, GAMMA)
    assert jnp.allclose(loss, ref, rtol=1e-5, atol=1e-5), (loss, ref)

    # Larger case: exercises the multi-chunk streaming logsumexp, the clamped
    # index map for the shorter stream, and the tail mask.
    sp_big = jax.random.uniform(kp2, (1000,), dtype=jnp.float32, minval=-1.0, maxval=1.0)
    sn_big = jax.random.uniform(kn2, (40000,), dtype=jnp.float32, minval=-1.0, maxval=1.0)
    loss_big = jax.block_until_ready(loss_fn(sp_big, sn_big))
    ref_big = circle_loss_ref(sp_big, sn_big, M, GAMMA)
    assert jnp.allclose(loss_big, ref_big, rtol=1e-4, atol=1e-4), (loss_big, ref_big)

    print("KERNEL_OK")
</pallas_src>

<mosaic_0001>
module attributes {stable_mosaic.version = 11 : i64} {
  func.func @kernel(%arg0: i32, %arg1: memref<8x128xf32, #tpu.memory_space<vmem>>, %arg2: memref<8x128xf32, #tpu.memory_space<vmem>>, %arg3: memref<1x1xf32, #tpu.memory_space<vmem>>, %arg4: memref<1x1xf32, #tpu.memory_space<vmem>>, %arg5: memref<1x1xf32, #tpu.memory_space<vmem>>, %arg6: memref<1x1xf32, #tpu.memory_space<vmem>>, %arg7: memref<1x1xf32, #tpu.memory_space<vmem>>) attributes {dimension_semantics = [#tpu.dimension_semantics<arbitrary>], iteration_bounds = array<i64: 1>, scalar_prefetch = 0 : i64, scratch_operands = 4 : i64, tpu.core_type = #tpu.core_type<tc>, window_params = [{transform_indices = @transform_0, window_bounds = array<i64: 8, 128>}, {transform_indices = @transform_1, window_bounds = array<i64: 8, 128>}, {pipeline_mode = #tpu.pipeline_mode<synchronous>, transform_indices = @transform_2, window_bounds = array<i64: 1, 1>}]} {
    %c0_i32 = arith.constant 0 : i32
    %0 = arith.cmpi eq, %arg0, %c0_i32 : i32
    %1 = arith.extui %0 : i1 to i32
    %c0_i32_0 = arith.constant 0 : i32
    %2 = arith.cmpi ne, %1, %c0_i32_0 : i32
    scf.if %2 {
      %cst_42 = arith.constant -1.000000e+30 : f32
      %90 = vector.broadcast %cst_42 : f32 to vector<1x1xf32>
      %c0_43 = arith.constant 0 : index
      %c0_44 = arith.constant 0 : index
      %91 = vector.load %arg4[%c0_43, %c0_44] : memref<1x1xf32, #tpu.memory_space<vmem>>, vector<1x1xf32>
      tpu.vector_store %arg4[%c0_43, %c0_44], %90 {strides = array<i32>} : memref<1x1xf32, #tpu.memory_space<vmem>>, vector<1x1xf32>,
      %cst_45 = arith.constant 0.000000e+00 : f32
      %92 = vector.broadcast %cst_45 : f32 to vector<1x1xf32>
      %c0_46 = arith.constant 0 : index
      %c0_47 = arith.constant 0 : index
      %93 = vector.load %arg5[%c0_46, %c0_47] : memref<1x1xf32, #tpu.memory_space<vmem>>, vector<1x1xf32>
      tpu.vector_store %arg5[%c0_46, %c0_47], %92 {strides = array<i32>} : memref<1x1xf32, #tpu.memory_space<vmem>>, vector<1x1xf32>,
      %cst_48 = arith.constant -1.000000e+30 : f32
      %94 = vector.broadcast %cst_48 : f32 to vector<1x1xf32>
      %c0_49 = arith.constant 0 : index
      %c0_50 = arith.constant 0 : index
      %95 = vector.load %arg6[%c0_49, %c0_50] : memref<1x1xf32, #tpu.memory_space<vmem>>, vector<1x1xf32>
      tpu.vector_store %arg6[%c0_49, %c0_50], %94 {strides = array<i32>} : memref<1x1xf32, #tpu.memory_space<vmem>>, vector<1x1xf32>,
      %cst_51 = arith.constant 0.000000e+00 : f32
      %96 = vector.broadcast %cst_51 : f32 to vector<1x1xf32>
      %c0_52 = arith.constant 0 : index
      %c0_53 = arith.constant 0 : index
      %97 = vector.load %arg7[%c0_52, %c0_53] : memref<1x1xf32, #tpu.memory_space<vmem>>, vector<1x1xf32>
      tpu.vector_store %arg7[%c0_52, %c0_53], %96 {strides = array<i32>} : memref<1x1xf32, #tpu.memory_space<vmem>>, vector<1x1xf32>,
    } else {
    }
    %c0 = arith.constant 0 : index
    %c0_1 = arith.constant 0 : index
    %3 = vector.load %arg1[%c0, %c0_1] : memref<8x128xf32, #tpu.memory_space<vmem>>, vector<8x128xf32>
    %4 = tpu.iota {dimensions = array<i32: 0>} : vector<8x128xi32>
    %5 = tpu.iota {dimensions = array<i32: 1>} : vector<8x128xi32>
    %c8_i32 = arith.constant 8 : i32
    %6 = arith.muli %arg0, %c8_i32 : i32
    %7 = vector.broadcast %6 : i32 to vector<8x128xi32>
    %8 = arith.addi %7, %4 : vector<8x128xi32>
    %c128_i32 = arith.constant 128 : i32
    %9 = vector.broadcast %c128_i32 : i32 to vector<8x128xi32>
    %10 = arith.muli %8, %9 : vector<8x128xi32>
    %11 = arith.addi %10, %5 : vector<8x128xi32>
    %c8_i32_2 = arith.constant 8 : i32
    %12 = vector.broadcast %c8_i32_2 : i32 to vector<8x128xi32>
    %13 = arith.cmpi slt, %11, %12 : vector<8x128xi32>
    %cst = arith.constant 1.250000e+00 : f32
    %14 = vector.broadcast %cst : f32 to vector<8x128xf32>
    %15 = arith.subf %14, %3 : vector<8x128xf32>
    %cst_3 = arith.constant 0.000000e+00 : f32
    %16 = vector.broadcast %cst_3 : f32 to vector<8x128xf32>
    %17 = arith.maximumf %15, %16 : vector<8x128xf32>
    %cst_4 = arith.constant 6.400000e+01 : f32
    %18 = vector.broadcast %cst_4 : f32 to vector<8x128xf32>
    %19 = arith.mulf %17, %18 : vector<8x128xf32>
    %cst_5 = arith.constant 7.500000e-01 : f32
    %20 = vector.broadcast %cst_5 : f32 to vector<8x128xf32>
    %21 = arith.subf %20, %3 : vector<8x128xf32>
    %22 = arith.mulf %19, %21 : vector<8x128xf32>
    %cst_6 = arith.constant -1.000000e+30 : f32
    %23 = vector.broadcast %cst_6 : f32 to vector<8x128xf32>
    %24 = arith.select %13, %22, %23 : vector<8x128xi1>, vector<8x128xf32>
    %c0_7 = arith.constant 0 : index
    %c0_8 = arith.constant 0 : index
    %25 = vector.load %arg4[%c0_7, %c0_8] : memref<1x1xf32, #tpu.memory_space<vmem>>, vector<1x1xf32>
    %cst_9 = arith.constant dense<0xFF800000> : vector<8xf32>
    %26 = vector.multi_reduction <maximumf>, %24, %cst_9 [1] : vector<8x128xf32> to vector<8xf32>
    %27 = vector.shape_cast %26 : vector<8xf32> to vector<8x1xf32>
    %cst_10 = arith.constant dense<0xFF800000> : vector<1xf32>
    %28 = vector.multi_reduction <maximumf>, %27, %cst_10 [0] : vector<8x1xf32> to vector<1xf32>
    %29 = vector.shape_cast %28 : vector<1xf32> to vector<1x1xf32>
    %30 = arith.maximumf %25, %29 : vector<1x1xf32>
    %c0_11 = arith.constant 0 : index
    %c0_12 = arith.constant 0 : index
    %31 = vector.load %arg5[%c0_11, %c0_12] : memref<1x1xf32, #tpu.memory_space<vmem>>, vector<1x1xf32>
    %32 = arith.subf %25, %30 : vector<1x1xf32>
    %33 = math.exp %32 : vector<1x1xf32>
    %34 = arith.mulf %31, %33 : vector<1x1xf32>
    %35 = vector.broadcast %30 : vector<1x1xf32> to vector<8x128xf32>
    %36 = arith.subf %24, %35 : vector<8x128xf32>
    %37 = math.exp %36 : vector<8x128xf32>
    %cst_13 = arith.constant dense<0.000000e+00> : vector<8xf32>
    %38 = vector.multi_reduction <add>, %37, %cst_13 [1] : vector<8x128xf32> to vector<8xf32>
    %39 = vector.shape_cast %38 : vector<8xf32> to vector<8x1xf32>
    %cst_14 = arith.constant dense<0.000000e+00> : vector<1xf32>
    %40 = vector.multi_reduction <add>, %39, %cst_14 [0] : vector<8x1xf32> to vector<1xf32>
    %41 = vector.shape_cast %40 : vector<1xf32> to vector<1x1xf32>
    %42 = arith.addf %34, %41 : vector<1x1xf32>
    %c0_15 = arith.constant 0 : index
    %c0_16 = arith.constant 0 : index
    %43 = vector.load %arg4[%c0_15, %c0_16] : memref<1x1xf32, #tpu.memory_space<vmem>>, vector<1x1xf32>
    tpu.vector_store %arg4[%c0_15, %c0_16], %30 {strides = array<i32>} : memref<1x1xf32, #tpu.memory_space<vmem>>, vector<1x1xf32>,
    %c0_17 = arith.constant 0 : index
    %c0_18 = arith.constant 0 : index
    %44 = vector.load %arg5[%c0_17, %c0_18] : memref<1x1xf32, #tpu.memory_space<vmem>>, vector<1x1xf32>
    tpu.vector_store %arg5[%c0_17, %c0_18], %42 {strides = array<i32>} : memref<1x1xf32, #tpu.memory_space<vmem>>, vector<1x1xf32>,
    %c0_19 = arith.constant 0 : index
    %c0_20 = arith.constant 0 : index
    %45 = vector.load %arg2[%c0_19, %c0_20] : memref<8x128xf32, #tpu.memory_space<vmem>>, vector<8x128xf32>
    %46 = tpu.iota {dimensions = array<i32: 0>} : vector<8x128xi32>
    %47 = tpu.iota {dimensions = array<i32: 1>} : vector<8x128xi32>
    %c8_i32_21 = arith.constant 8 : i32
    %48 = arith.muli %arg0, %c8_i32_21 : i32
    %49 = vector.broadcast %48 : i32 to vector<8x128xi32>
    %50 = arith.addi %49, %46 : vector<8x128xi32>
    %c128_i32_22 = arith.constant 128 : i32
    %51 = vector.broadcast %c128_i32_22 : i32 to vector<8x128xi32>
    %52 = arith.muli %50, %51 : vector<8x128xi32>
    %53 = arith.addi %52, %47 : vector<8x128xi32>
    %c24_i32 = arith.constant 24 : i32
    %54 = vector.broadcast %c24_i32 : i32 to vector<8x128xi32>
    %55 = arith.cmpi slt, %53, %54 : vector<8x128xi32>
    %cst_23 = arith.constant 2.500000e-01 : f32
    %56 = vector.broadcast %cst_23 : f32 to vector<8x128xf32>
    %57 = arith.addf %45, %56 : vector<8x128xf32>
    %cst_24 = arith.constant 0.000000e+00 : f32
    %58 = vector.broadcast %cst_24 : f32 to vector<8x128xf32>
    %59 = arith.maximumf %57, %58 : vector<8x128xf32>
    %cst_25 = arith.constant 6.400000e+01 : f32
    %60 = vector.broadcast %cst_25 : f32 to vector<8x128xf32>
    %61 = arith.mulf %59, %60 : vector<8x128xf32>
    %cst_26 = arith.constant 2.500000e-01 : f32
    %62 = vector.broadcast %cst_26 : f32 to vector<8x128xf32>
    %63 = arith.subf %45, %62 : vector<8x128xf32>
    %64 = arith.mulf %61, %63 : vector<8x128xf32>
    %cst_27 = arith.constant -1.000000e+30 : f32
    %65 = vector.broadcast %cst_27 : f32 to vector<8x128xf32>
    %66 = arith.select %55, %64, %65 : vector<8x128xi1>, vector<8x128xf32>
    %c0_28 = arith.constant 0 : index
    %c0_29 = arith.constant 0 : index
    %67 = vector.load %arg6[%c0_28, %c0_29] : memref<1x1xf32, #tpu.memory_space<vmem>>, vector<1x1xf32>
    %cst_30 = arith.constant dense<0xFF800000> : vector<8xf32>
    %68 = vector.multi_reduction <maximumf>, %66, %cst_30 [1] : vector<8x128xf32> to vector<8xf32>
    %69 = vector.shape_cast %68 : vector<8xf32> to vector<8x1xf32>
    %cst_31 = arith.constant dense<0xFF800000> : vector<1xf32>
    %70 = vector.multi_reduction <maximumf>, %69, %cst_31 [0] : vector<8x1xf32> to vector<1xf32>
    %71 = vector.shape_cast %70 : vector<1xf32> to vector<1x1xf32>
    %72 = arith.maximumf %67, %71 : vector<1x1xf32>
    %c0_32 = arith.constant 0 : index
    %c0_33 = arith.constant 0 : index
    %73 = vector.load %arg7[%c0_32, %c0_33] : memref<1x1xf32, #tpu.memory_space<vmem>>, vector<1x1xf32>
    %74 = arith.subf %67, %72 : vector<1x1xf32>
    %75 = math.exp %74 : vector<1x1xf32>
    %76 = arith.mulf %73, %75 : vector<1x1xf32>
    %77 = vector.broadcast %72 : vector<1x1xf32> to vector<8x128xf32>
    %78 = arith.subf %66, %77 : vector<8x128xf32>
    %79 = math.exp %78 : vector<8x128xf32>
    %cst_34 = arith.constant dense<0.000000e+00> : vector<8xf32>
    %80 = vector.multi_reduction <add>, %79, %cst_34 [1] : vector<8x128xf32> to vector<8xf32>
    %81 = vector.shape_cast %80 : vector<8xf32> to vector<8x1xf32>
    %cst_35 = arith.constant dense<0.000000e+00> : vector<1xf32>
    %82 = vector.multi_reduction <add>, %81, %cst_35 [0] : vector<8x1xf32> to vector<1xf32>
    %83 = vector.shape_cast %82 : vector<1xf32> to vector<1x1xf32>
    %84 = arith.addf %76, %83 : vector<1x1xf32>
    %c0_36 = arith.constant 0 : index
    %c0_37 = arith.constant 0 : index
    %85 = vector.load %arg6[%c0_36, %c0_37] : memref<1x1xf32, #tpu.memory_space<vmem>>, vector<1x1xf32>
    tpu.vector_store %arg6[%c0_36, %c0_37], %72 {strides = array<i32>} : memref<1x1xf32, #tpu.memory_space<vmem>>, vector<1x1xf32>,
    %c0_38 = arith.constant 0 : index
    %c0_39 = arith.constant 0 : index
    %86 = vector.load %arg7[%c0_38, %c0_39] : memref<1x1xf32, #tpu.memory_space<vmem>>, vector<1x1xf32>
    tpu.vector_store %arg7[%c0_38, %c0_39], %84 {strides = array<i32>} : memref<1x1xf32, #tpu.memory_space<vmem>>, vector<1x1xf32>,
    %c0_i32_40 = arith.constant 0 : i32
    %87 = arith.cmpi eq, %arg0, %c0_i32_40 : i32
    %88 = arith.extui %87 : i1 to i32
    %c0_i32_41 = arith.constant 0 : i32
    %89 = arith.cmpi ne, %88, %c0_i32_41 : i32
    scf.if %89 {
      %c0_42 = arith.constant 0 : index
      %c0_43 = arith.constant 0 : index
      %90 = vector.load %arg4[%c0_42, %c0_43] : memref<1x1xf32, #tpu.memory_space<vmem>>, vector<1x1xf32>
      %c0_44 = arith.constant 0 : index
      %c0_45 = arith.constant 0 : index
      %91 = vector.load %arg5[%c0_44, %c0_45] : memref<1x1xf32, #tpu.memory_space<vmem>>, vector<1x1xf32>
      %92 = math.log %91 : vector<1x1xf32>
      %93 = arith.addf %90, %92 : vector<1x1xf32>
      %c0_46 = arith.constant 0 : index
      %c0_47 = arith.constant 0 : index
      %94 = vector.load %arg6[%c0_46, %c0_47] : memref<1x1xf32, #tpu.memory_space<vmem>>, vector<1x1xf32>
      %c0_48 = arith.constant 0 : index
      %c0_49 = arith.constant 0 : index
      %95 = vector.load %arg7[%c0_48, %c0_49] : memref<1x1xf32, #tpu.memory_space<vmem>>, vector<1x1xf32>
      %96 = math.log %95 : vector<1x1xf32>
      %97 = arith.addf %94, %96 : vector<1x1xf32>
      %98 = arith.addf %93, %97 : vector<1x1xf32>
      %cst_50 = arith.constant 0.000000e+00 : f32
      %99 = vector.broadcast %cst_50 : f32 to vector<1x1xf32>
      %100 = arith.maximumf %98, %99 : vector<1x1xf32>
      %101 = math.absf %98 : vector<1x1xf32>
      %cst_51 = arith.constant 0.000000e+00 : f32
      %102 = vector.broadcast %cst_51 : f32 to vector<1x1xf32>
      %103 = arith.subf %102, %101 : vector<1x1xf32>
      %104 = math.exp %103 : vector<1x1xf32>
      %105 = math.log1p %104 : vector<1x1xf32>
      %106 = arith.addf %100, %105 : vector<1x1xf32>
      %c0_52 = arith.constant 0 : index
      %c0_53 = arith.constant 0 : index
      %107 = vector.load %arg3[%c0_52, %c0_53] : memref<1x1xf32, #tpu.memory_space<vmem>>, vector<1x1xf32>
      tpu.vector_store %arg3[%c0_52, %c0_53], %106 {strides = array<i32>} : memref<1x1xf32, #tpu.memory_space<vmem>>, vector<1x1xf32>,
    } else {
    }
    return
  }
  func.func @transform_0(%arg0: i32) -> (i32, i32) {
    %c0_i32 = arith.constant 0 : i32
    %0 = arith.minsi %arg0, %c0_i32 : i32
    %c0_i32_0 = arith.constant 0 : i32
    %c0_i32_1 = arith.constant 0 : i32
    return %0, %c0_i32_0 : i32, i32
  }
  func.func @transform_1(%arg0: i32) -> (i32, i32) {
    %c0_i32 = arith.constant 0 : i32
    %0 = arith.minsi %arg0, %c0_i32 : i32
    %c0_i32_0 = arith.constant 0 : i32
    %c0_i32_1 = arith.constant 0 : i32
    return %0, %c0_i32_0 : i32, i32
  }
  func.func @transform_2(%arg0: i32) -> (i32, i32) {
    %c0_i32 = arith.constant 0 : i32
    %c0_i32_0 = arith.constant 0 : i32
    %c0_i32_1 = arith.constant 0 : i32
    return %c0_i32, %c0_i32_0 : i32, i32
  }
}

</mosaic_0001>

<bundles_post_ra>
// kernel: tpu_custom_call.1
= control target key start
LH: loop header
LB: loop body
LE: loop exit
PB: predicated region body
PF: predicated region fallthrough
CT: control target
= control target key end

     0   :  { %7 = vsyncpa [#allocation7], 0  ;;  %s335_s0 = inlined_call_operand.hbm [shape: f32[8,128], index: 0, kind: input, shape index: {}]   ;;  %s336_s1 = inlined_call_operand.hbm [shape: f32[8,128], index: 1, kind: input, shape index: {}]   ;;  %s337_s2 = inlined_call_operand.hbm [shape: f32[1,1], index: 2, kind: output, shape index: {}]  }
   0x1   :  { %8 = vsyncpa [#allocation10], 0 }
   0x2   :  { %9 = vsyncpa [#allocation8], 0  ;;  %s15_s11 = sshll.u32 %s335_s0, 4  ;;  %s296_s12 = smov [#allocation6]   ;;  %s16_s11 = int_to_ptr.hbm [resolvable:$true] %s15_s11 }
   0x3   :  { %s17_s13 = sshll.u32 %s296_s12, 4  ;;  %s26_s16 = sshll.u32 %s336_s1, 4  ;;  %s18_s13 = int_to_ptr.vmem [resolvable:$true] %s17_s13  ;;  %s27_s16 = int_to_ptr.hbm [resolvable:$true] %s26_s16 }
   0x4   :  { %20 = dma.hbm_to_vmem [thread:$0]  %s16_s11, 128, %s18_s13, [#allocation7]  }
   0x5   :  { %s297_s17 = smov [#allocation9]  }
   0x6   :  { %s28_s18 = sshll.u32 %s297_s17, 4  ;;  %s29_s18 = int_to_ptr.vmem [resolvable:$true] %s28_s18 }
   0x7   :  { %31 = dma.hbm_to_vmem [thread:$0]  %s27_s16, 128, %s29_s18, [#allocation10]  }
   0x8   :  { %290 = dma.done.wait [#allocation7], 128  }
   0x9   :  { %291 = vsyncadd [#allocation7], 4294967168 }
   0xa   :  { %292 = dma.done.wait [#allocation10], 128  }
   0xb   :  { %293 = vsyncadd [#allocation10], 4294967168  ;;  %v50_v0 = vlaneseq  ;;  %v49_v4 = vld [vmem:[#allocation6] sm:$0xff]  ;;  %v102_v5 = vld [vmem:[#allocation9] sm:$0xff]  ;;  %vm44_vm2 = vcmask 0   ;;  %v299_v20 = vmov 0  }
   0xc   :  { %v60_v6 = vsub.f32 1.25, %v49_v4  ;;  %v104_v8 = vadd.f32 0.25, %v102_v5  ;;  %v63_v10 = vsub.f32 0.75, %v49_v4  ;;  %v193_v15 = vadd.f32 -0.25, %v102_v5  ;;  %200 = vset.pattern.permute.xlu1 %v299_v20  ;;  %201 = vset.pattern.permute.xlu0 %v299_v20  ;;  %s301_s0 = smov [#allocation11]   ;;  %s182_s21 = sshll.u32 %s337_s2, 4  ;;  %s183_s21 = int_to_ptr.hbm [resolvable:$true] %s182_s21 }
   0xd   :  { %v51_v1 = vshrl.u32 %v50_v0, 7  ;;  %v53_v2 = vand.u32 127, %v50_v0  ;;  %v298_v19 = vmov -1e+30   ;;  %v300_v21 = vmov 0.0   ;;  %s180_s1 = sshll.u32 %s301_s0, 4  ;;  %s181_s1 = int_to_ptr.vmem [resolvable:$true] %s180_s1 }
   0xe   :  { %v61_v9 = vmax.f32 %v60_v6, 0.0  ;;  %v105_v11 = vmax.f32 %v104_v8, 0.0  ;;  %47 = vst.msk [vmem:[#allocation4] sm:$0x1] %vm44_vm2, %v298_v19 }
   0xf   :  { %v57_v3 = vmul.u32 128, %v51_v1  ;;  %45 = vst.msk [vmem:[#allocation2] sm:$0x1] %vm44_vm2, %v298_v19 }
  0x10   :  { %v62_v12 = vmul.f32 64.0, %v61_v9  ;;  %v106_v14 = vmul.f32 64.0, %v105_v11  ;;  %46 = vst.msk [vmem:[#allocation3] sm:$0x1] %vm44_vm2, %v300_v21 }
  0x11   :  { %v58_v7 = vadd.s32 %v57_v3, %v53_v2  ;;  %48 = vst.msk [vmem:[#allocation5] sm:$0x1] %vm44_vm2, %v300_v21 }
  0x12   :  { %v64_v13 = vmul.f32 %v63_v10, %v62_v12  ;;  %v108_v17 = vmul.f32 %v193_v15, %v106_v14 }
  0x13   :  { %vm59_vm0 = vcmp.lt.s32.totalorder %v58_v7, 8  ;;  %vm103_vm1 = vcmp.lt.s32.totalorder %v58_v7, 24 }
  0x14   :  { %v65_v16 = vsel %vm59_vm0, %v64_v13, -1e+30  ;;  %v109_v18 = vsel %vm103_vm1, %v108_v17, -1e+30 }
  0x15   :  { %67 = vmax.xlane.f32.xlu0 %v65_v16  ;;  %v110_v39 = vld [vmem:[#allocation4] sm:$0x1] }
  0x16   :  { %v66_v30 = vld [vmem:[#allocation2] sm:$0x1] }
  0x17   :  { %v76_v60 = vld [vmem:[#allocation3] sm:$0x1] }
  0x18   :  { %v120_v7 = vld [vmem:[#allocation5] sm:$0x1] }
  0x1d   :  { %111 = vmax.xlane.f32.xlu0 %v109_v18 }
  0x88   :  { %v68_v22 = vpop.xlane.xlu0 %67 }
  0x89   :  { %v69_v23 = vrot.slane %v68_v22, 4 }
  0x8b   :  { %v70_v24 = vmax.f32 %v68_v22, %v69_v23 }
  0x8d   :  { %v71_v25 = vrot.slane %v70_v24, 2 }
  0x8f   :  { %v72_v26 = vmax.f32 %v70_v24, %v71_v25 }
  0x90   :  { %v112_v27 = vpop.xlane.xlu0 %111 }
  0x91   :  { %v73_v28 = vrot.slane %v72_v26, 1  ;;  %v113_v29 = vrot.slane %v112_v27, 4 }
  0x93   :  { %v74_v31 = vmax.f32 %v72_v26, %v73_v28  ;;  %v114_v32 = vmax.f32 %v112_v27, %v113_v29 }
  0x95   :  { %v115_v33 = vrot.slane %v114_v32, 2  ;;  %v75_v34 = vmax.f32 %v66_v30, %v74_v31 }
  0x97   :  { %v116_v35 = vmax.f32 %v114_v32, %v115_v33  ;;  %v82_v36 = vperm.slane %v75_v34, 0  ;;  %100 = vst.msk [vmem:[#allocation2] sm:$0x1] %vm44_vm2, %v75_v34  ;;  %v77_v37 = vsub.f32 %v66_v30, %v75_v34 }
  0x99   :  { %v117_v38 = vrot.slane %v116_v35, 1  ;;  %84 = vperm.xlu1 %200, %v82_v36   ;;  %v78_v52 = vmul.f32 1.442695, %v77_v37 }
  0x9b   :  { %v118_v40 = vmax.f32 %v116_v35, %v117_v38 }
  0x9d   :  { %v119_v41 = vmax.f32 %v110_v39, %v118_v40 }
  0x9f   :  { %v121_v42 = vsub.f32 %v110_v39, %v119_v41  ;;  %143 = vst.msk [vmem:[#allocation4] sm:$0x1] %vm44_vm2, %v119_v41  ;;  %v126_v43 = vperm.slane %v119_v41, 0 }
  0xa1   :  { %128 = vperm.xlu1 %200, %v126_v43   ;;  %v122_v57 = vmul.f32 1.442695, %v121_v42 }
  0xa6   :  { %v153_v19 = vld [vmem:[#allocation4] sm:$0x1] }
 0x10b   :  { %v85_v44 = vpop.permute.xlu1 %84 }
 0x10c   :  { %v87_v45 = vsub.f32 %v65_v16, %v85_v44 }
 0x10e   :  { %v88_v46 = vmul.f32 1.442695, %v87_v45 }
 0x110   :  { %202 = vpow2.f32 %v88_v46 }
 0x113   :  { %v129_v47 = vpop.permute.xlu1 %128 }
 0x114   :  { %v131_v48 = vsub.f32 %v109_v18, %v129_v47  ;;  %v148_v18 = vld [vmem:[#allocation2] sm:$0x1] }
 0x116   :  { %v203_v49 = vpop.eup %202  ;;  %v132_v50 = vmul.f32 1.442695, %v131_v48 }
 0x117   :  { %90 = vadd.xlane.f32.xlu2 %v203_v49 }
 0x118   :  { %204 = vpow2.f32 %v132_v50 }
 0x119   :  { %206 = vpow2.f32 %v78_v52 }
 0x11a   :  { %208 = vpow2.f32 %v122_v57 }
 0x11e   :  { %v205_v51 = vpop.eup %204 }
 0x11f   :  { %134 = vadd.xlane.f32.xlu2 %v205_v51  ;;  %v207_v59 = vpop.eup %206 }
 0x120   :  { %v80_v0 = vmul.f32 %v207_v59, %v76_v60  ;;  %v209_v6 = vpop.eup %208 }
 0x121   :  { %v124_v9 = vmul.f32 %v209_v6, %v120_v7 }
 0x18a   :  { %v91_v53 = vpop.xlane.xlu2 %90 }
 0x18b   :  { %v92_v54 = vrot.slane %v91_v53, 4 }
 0x18d   :  { %v93_v55 = vadd.f32 %v92_v54, %v91_v53 }
 0x18f   :  { %v94_v56 = vrot.slane %v93_v55, 2 }
 0x191   :  { %v95_v58 = vadd.f32 %v94_v56, %v93_v55 }
 0x192   :  { %v135_v61 = vpop.xlane.xlu2 %134 }
 0x193   :  { %v96_v62 = vrot.slane %v95_v58, 1  ;;  %v136_v63 = vrot.slane %v135_v61, 4 }
 0x195   :  { %v97_v1 = vadd.f32 %v96_v62, %v95_v58  ;;  %v137_v2 = vadd.f32 %v136_v63, %v135_v61 }
 0x197   :  { %v98_v3 = vadd.f32 %v97_v1, %v80_v0  ;;  %v138_v4 = vrot.slane %v137_v2, 2 }
 0x199   :  { %101 = vst.msk [vmem:[#allocation3] sm:$0x1] %vm44_vm2, %v98_v3  ;;  %v139_v5 = vadd.f32 %v138_v4, %v137_v2 }
 0x19b   :  { %v140_v8 = vrot.slane %v139_v5, 1 }
 0x19d   :  { %v141_v10 = vadd.f32 %v140_v8, %v139_v5 }
 0x19f   :  { %v142_v11 = vadd.f32 %v141_v10, %v124_v9 }
 0x1a0   :  { %v149_v12 = vld [vmem:[#allocation3] sm:$0x1] }
 0x1a1   :  { %144 = vst.msk [vmem:[#allocation5] sm:$0x1] %vm44_vm2, %v142_v11  ;;  %210 = vlog2.f32 %v149_v12 }
 0x1a7   :  { %v211_v14 = vpop.eup %210 }
 0x1a8   :  { %v154_v13 = vld [vmem:[#allocation5] sm:$0x1]  ;;  %v151_v15 = vmul.f32 0.6931472, %v211_v14 }
 0x1a9   :  { %212 = vlog2.f32 %v154_v13 }
 0x1aa   :  { %v152_v20 = vadd.f32 %v151_v15, %v148_v18 }
 0x1af   :  { %v213_v16 = vpop.eup %212 }
 0x1b0   :  { %v156_v17 = vmul.f32 0.6931472, %v213_v16 }
 0x1b2   :  { %v157_v21 = vadd.f32 %v156_v17, %v153_v19 }
 0x1b4   :  { %v158_v22 = vadd.f32 %v157_v21, %v152_v20 }
 0x1b6   :  { %v160_v23 = vand.u32 2147483647, %v158_v22  ;;  %v159_v34 = vmax.f32 %v158_v22, 0.0 }
 0x1b8   :  { %v161_v24 = vsub.f32 0.0, %v160_v23 }
 0x1ba   :  { %v162_v25 = vmul.f32 1.442695, %v161_v24 }
 0x1bc   :  { %214 = vpow2.f32 %v162_v25 }
 0x1c2   :  { %v215_v26 = vpop.eup %214 }
 0x1c3   :  { %v164_v27 = vadd.f32 1.0, %v215_v26  ;;  %v167_v28 = vmul.f32 -0.5, %v215_v26  ;;  %v170_v30 = vand.u32 2147483647, %v215_v26 }
 0x1c5   :  { %216 = vlog2.f32 %v164_v27  ;;  %v168_v29 = vadd.f32 1.0, %v167_v28  ;;  %vm171_vm3 = vcmp.lt.f32.partialorder %v170_v30, 0.0004427343 }
 0x1c7   :  { %v169_v33 = vmul.f32 %v215_v26, %v168_v29 }
 0x1cb   :  { %v217_v31 = vpop.eup %216 }
 0x1cc   :  { %v166_v32 = vmul.f32 0.6931472, %v217_v31 }
 0x1ce   :  { %v172_v35 = vsel %vm171_vm3, %v169_v33, %v166_v32 }
 0x1cf   :  { %v173_v36 = vadd.f32 %v172_v35, %v159_v34 }
 0x1d1   :  { %174 = vst.msk [vmem:[#allocation11] sm:$0x1] %vm44_vm2, %v173_v36 }
 0x1d2   :  { %185 = dma.vmem_to_hbm [thread:$0]  %s181_s1, 16, %s183_s21, [#allocation8]  }
 0x1d3   :  { %294 = dma.done.wait [#allocation8], 16  }
 0x1d4   :  { %295 = vsyncadd [#allocation8], 4294967280 }
 0x1d5   :  { %190 = vsyncpa [#allocation7], 1 }
 0x1d6   :  { %191 = vsyncpa [#allocation10], 1 }
 0x1d7   :  { %192 = vsyncpa [#allocation8], 1 }

</bundles_post_ra>
